<compile_context>
chip_gen: v7x
topology: tpu7x:2x2x1
jax: 0.10.0
libtpu: 0.0.40
codegen_flags: <defaults>
</compile_context>

<pallas_src>
import jax
import jax.numpy as jnp
from jax.experimental import pallas as pl
from jax.experimental.pallas import tpu as pltpu


def _round_up(x: int, m: int) -> int:
    return ((x + m - 1) // m) * m


def _two_layer_kernel(x_ref, w1_ref, w2_ref, o_ref):
    # (TB, K)bf16 @ (K, Hp)bf16 -> (TB, Hp) f32 accumulate on the MXU.
    h = jnp.dot(x_ref[...], w1_ref[...], preferred_element_type=jnp.float32)
    # Sigmoid in f32 (EUP exp + VPU) for accuracy.
    h = jax.nn.sigmoid(h)
    # (TB, Hp)bf16 @ (Hp, Op)bf16 -> (TB, Op) f32 accumulate on the MXU.
    o_ref[...] = jnp.dot(
        h.astype(w2_ref.dtype), w2_ref[...],
        preferred_element_type=jnp.float32,
    ).astype(o_ref.dtype)


_SMALL_B = 128                       # below this, one no-grid call wins
_VMEM_BUDGET = 24 * 1024 * 1024      # budget for blocks + weight buffers
_VMEM_LIMIT = 32 * 1024 * 1024       # scoped VMEM limit passed to Mosaic


def _pick_block_b(B: int, K: int, H_pad: int, O_pad: int) -> int:
    """Largest batch tile (multiple of 8) whose double-buffered x/out blocks
    plus 2x resident weight buffers fit the VMEM budget; also capped at
    ceil(B/2) so the grid has >= 2 steps (both TensorCores engage on v7x)."""
    # bf16 x block + f32 out block (both 2-deep) + f32 intermediate h.
    per_row = 2 * (K * 2) + 2 * (O_pad * 4) + H_pad * 4
    weight_bytes = 2 * (K * H_pad + H_pad * O_pad) * 2   # 2 buffers each, bf16
    avail = _VMEM_BUDGET - weight_bytes
    block_b = max(8, (avail // per_row) // 8 * 8) if avail > 0 else 8
    block_b = min(block_b, 2048)
    half_b = _round_up(-(-B // 2), 8)
    return max(8, min(block_b, half_b))


@jax.jit
def two_layer_conv_forward(x_nchw, w_conv, w_lin):
    """Forward pass matching the PyTorch module (sigmoid activation).

    x_nchw : (B, 1, D, D)  float32
    w_conv : (H, 1, D, D)  float32   (Conv2d weight, full-image kernel)
    w_lin  : (O, H)        float32   (Linear weight)
    returns: (B, O)        float32
    """
    B = x_nchw.shape[0]
    D = x_nchw.shape[-1]
    H = w_conv.shape[0]
    O = w_lin.shape[0]
    K = D * D

    O_pad = _round_up(max(O, 128), 128)
    H_pad = _round_up(max(H, 128), 128)

    # One-time wrapper-side prep (fused by XLA): flatten + bf16 cast of x; a
    # single transpose + zero-pad + bf16 cast of each weight. No padding of x.
    x_flat = x_nchw.reshape(B, K).astype(jnp.bfloat16)                 # (B, K)
    w1_t = jnp.pad(w_conv.reshape(H, K).T,
                   ((0, 0), (0, H_pad - H))).astype(jnp.bfloat16)      # (K, Hp)
    w2_t = jnp.pad(w_lin.T,
                   ((0, H_pad - H), (0, O_pad - O))).astype(jnp.bfloat16)  # (Hp, Op)

    if B <= _SMALL_B:
        # Small case: single invocation, no grid, no pipeline scaffolding —
        # everything resident in VMEM.
        out = pl.pallas_call(
            _two_layer_kernel,
            out_shape=jax.ShapeDtypeStruct((B, O_pad), jnp.float32),
            in_specs=[
                pl.BlockSpec(memory_space=pltpu.MemorySpace.VMEM),
                pl.BlockSpec(memory_space=pltpu.MemorySpace.VMEM),
                pl.BlockSpec(memory_space=pltpu.MemorySpace.VMEM),
            ],
            out_specs=pl.BlockSpec(memory_space=pltpu.MemorySpace.VMEM),
        )(x_flat, w1_t, w2_t)
    else:
        # Scaled case: tile only the batch axis; weights stay resident across
        # grid steps (constant index_map, never re-fetched); batch axis is
        # "parallel" (megacore sharding on v7x). Partial edge block handles a
        # non-multiple batch — no jnp.pad HBM round-trip on x.
        block_b = _pick_block_b(B, K, H_pad, O_pad)
        out = pl.pallas_call(
            _two_layer_kernel,
            out_shape=jax.ShapeDtypeStruct((B, O_pad), jnp.float32),
            grid=(pl.cdiv(B, block_b),),
            in_specs=[
                pl.BlockSpec((block_b, K), lambda i: (i, 0)),
                pl.BlockSpec((K, H_pad), lambda i: (0, 0)),
                pl.BlockSpec((H_pad, O_pad), lambda i: (0, 0)),
            ],
            out_specs=pl.BlockSpec((block_b, O_pad), lambda i: (i, 0)),
            compiler_params=pltpu.CompilerParams(
                dimension_semantics=("parallel",),
                vmem_limit_bytes=_VMEM_LIMIT,
            ),
        )(x_flat, w1_t, w2_t)

    return out[:, :O]


def _reference_bf16(x_nchw, w_conv, w_lin):
    """Same math as the kernel (bf16 operands, f32 accumulation) in pure JAX."""
    B = x_nchw.shape[0]
    H = w_conv.shape[0]
    xb = x_nchw.reshape(B, -1).astype(jnp.bfloat16).astype(jnp.float32)
    w1b = w_conv.reshape(H, -1).astype(jnp.bfloat16).astype(jnp.float32)
    w2b = w_lin.astype(jnp.bfloat16).astype(jnp.float32)
    h = jax.nn.sigmoid(xb @ w1b.T)
    return h.astype(jnp.bfloat16).astype(jnp.float32) @ w2b.T


if __name__ == "__main__":
    # Small shapes consistent with the module's forward.
    batch, input_dim, hidden_dim, output_dim = 2, 16, 32, 8

    key = jax.random.PRNGKey(0)
    k_x, k_w1, k_w2 = jax.random.split(key, 3)

    # Input: NCHW, single channel, spatial = input_dim x input_dim.
    x = jax.random.normal(k_x, (batch, 1, input_dim, input_dim), jnp.float32)

    # Deterministic init matching the module's 'default' branch.
    stdv1 = 1.0 / 28.0
    w_conv = jax.random.uniform(
        k_w1, (hidden_dim, 1, input_dim, input_dim), jnp.float32,
        minval=-stdv1, maxval=stdv1)
    stdv2 = 1.0 / float(output_dim) ** 0.5
    w_lin = jax.random.uniform(
        k_w2, (output_dim, hidden_dim), jnp.float32,
        minval=-stdv2, maxval=stdv2)

    # --- Small-shape run: no-grid, fully VMEM-resident path ---
    out = jax.block_until_ready(two_layer_conv_forward(x, w_conv, w_lin))
    assert out.shape == (batch, output_dim)

    # Check against the same bf16-operand math (tight) and against the full
    # f32 module math (loose, accounts for bf16 storage).
    ref_bf16 = _reference_bf16(x, w_conv, w_lin)
    assert jnp.allclose(out, ref_bf16, atol=5e-3, rtol=5e-3)
    ref_f32 = jax.nn.sigmoid(
        x.reshape(batch, -1) @ w_conv.reshape(hidden_dim, -1).T) @ w_lin.T
    assert jnp.allclose(out, ref_f32, atol=5e-2, rtol=5e-2)

    # --- Also exercise the batch-tiled path (>=2 grid steps, partial edge
    #     block, no x padding) ---
    batch_big = 300
    x_big = jax.random.normal(
        jax.random.PRNGKey(1), (batch_big, 1, input_dim, input_dim), jnp.float32)
    out_big = jax.block_until_ready(two_layer_conv_forward(x_big, w_conv, w_lin))
    assert out_big.shape == (batch_big, output_dim)
    ref_big = _reference_bf16(x_big, w_conv, w_lin)
    assert jnp.allclose(out_big, ref_big, atol=5e-3, rtol=5e-3)

    print("KERNEL_OK")
</pallas_src>

<mosaic_0001>
module attributes {stable_mosaic.version = 11 : i64} {
  func.func @_two_layer_kernel(%arg0: memref<2x256xbf16, #tpu.memory_space<vmem>>, %arg1: memref<256x128xbf16, #tpu.memory_space<vmem>>, %arg2: memref<128x128xbf16, #tpu.memory_space<vmem>>, %arg3: memref<2x128xf32, #tpu.memory_space<vmem>>) attributes {dimension_semantics = [], scalar_prefetch = 0 : i64, scratch_operands = 0 : i64, tpu.core_type = #tpu.core_type<tc>} {
    %c0 = arith.constant 0 : index
    %c0_0 = arith.constant 0 : index
    %0 = vector.load %arg0[%c0, %c0_0] : memref<2x256xbf16, #tpu.memory_space<vmem>>, vector<2x256xbf16>
    %c0_1 = arith.constant 0 : index
    %c0_2 = arith.constant 0 : index
    %1 = vector.load %arg1[%c0_1, %c0_2] : memref<256x128xbf16, #tpu.memory_space<vmem>>, vector<256x128xbf16>
    %cst = arith.constant dense<0.000000e+00> : vector<2x128xf32>
    %2 = tpu.matmul %0, %1, %cst {dimension_numbers = #tpu.dot_dimension_numbers<[1], [0], [0], [1], [0, 0, 1, 1], [], []>} : vector<2x256xbf16>, vector<256x128xbf16>, vector<2x128xf32> -> vector<2x128xf32>
    %3 = arith.negf %2 : vector<2x128xf32>
    %4 = math.exp %3 : vector<2x128xf32>
    %cst_3 = arith.constant 1.000000e+00 : f32
    %5 = vector.broadcast %cst_3 : f32 to vector<2x128xf32>
    %6 = arith.addf %5, %4 : vector<2x128xf32>
    %7 = arith.divf %5, %6 : vector<2x128xf32>
    %8 = arith.truncf %7 : vector<2x128xf32> to vector<2x128xbf16>
    %c0_4 = arith.constant 0 : index
    %c0_5 = arith.constant 0 : index
    %9 = vector.load %arg2[%c0_4, %c0_5] : memref<128x128xbf16, #tpu.memory_space<vmem>>, vector<128x128xbf16>
    %cst_6 = arith.constant dense<0.000000e+00> : vector<2x128xf32>
    %10 = tpu.matmul %8, %9, %cst_6 {dimension_numbers = #tpu.dot_dimension_numbers<[1], [0], [0], [1], [0, 0, 1, 1], [], []>} : vector<2x128xbf16>, vector<128x128xbf16>, vector<2x128xf32> -> vector<2x128xf32>
    %c0_7 = arith.constant 0 : index
    %c0_8 = arith.constant 0 : index
    %11 = vector.load %arg3[%c0_7, %c0_8] : memref<2x128xf32, #tpu.memory_space<vmem>>, vector<2x128xf32>
    tpu.vector_store %arg3[%c0_7, %c0_8], %10 {strides = array<i32>} : memref<2x128xf32, #tpu.memory_space<vmem>>, vector<2x128xf32>,
    return
  }
}

</mosaic_0001>

<bundles_post_ra>
// kernel: two_layer_conv_forward.1
= control target key start
LH: loop header
LB: loop body
LE: loop exit
PB: predicated region body
PF: predicated region fallthrough
CT: control target
= control target key end

     0   :  { %v61_v8 = vlaneseq  ;;  %v469_v15 = vmov 1966171168   ;;  %s580_s0 = inlined_call_operand.vmem [shape: bf16[2,256], index: 0, kind: input, shape index: {}]   ;;  %s581_s1 = inlined_call_operand.vmem [shape: bf16[256,128], index: 1, kind: input, shape index: {}]   ;;  %s582_s2 = inlined_call_operand.vmem [shape: bf16[128,128], index: 2, kind: input, shape index: {}]   ;;  %s583_s3 = inlined_call_operand.hbm [shape: f32[2,128], index: 3, kind: output, shape index: {}]  }
   0x1   :  { %v417_v0 = vld [vmem:[%s581_s1 + $0x40] sm:$0xff]   ;;  %v419_v2 = vld [vmem:[%s581_s1 + $0x48] sm:$0xff]   ;;  %v421_v4 = vld [vmem:[%s581_s1 + $0x50] sm:$0xff]   ;;  %v59_v16 = vunpack.c.l.s4 %v469_v15 }
   0x2   :  { %v418_v1 = vld [vmem:[%s581_s1] sm:$0xff]   ;;  %362 = vmatprep.subr.bf16.mxu0 %v417_v0  ;;  %v420_v3 = vld [vmem:[%s581_s1 + $0x8] sm:$0xff]   ;;  %v422_v5 = vld [vmem:[%s581_s1 + $0x10] sm:$0xff]   ;;  %v62_v12 = vshrl.u32 %v61_v8, 7 }
   0x3   :  { %363 = vmatpush3.bf16.msra.mxu0 %v418_v1  ;;  %v423_v6 = vld [vmem:[%s581_s1 + $0x58] sm:$0xff]   ;;  %v425_v9 = vld [vmem:[%s581_s1 + $0x60] sm:$0xff]   ;;  %v427_v11 = vld [vmem:[%s581_s1 + $0x68] sm:$0xff]   ;;  %v60_v19 = vunpack.c.0.s8 %v59_v16 }
   0x4   :  { %364 = vmatprep.subr.bf16.mxu0 %v419_v2  ;;  %v424_v7 = vld [vmem:[%s581_s1 + $0x18] sm:$0xff]   ;;  %v426_v10 = vld [vmem:[%s581_s1 + $0x20] sm:$0xff]   ;;  %v428_v14 = vld [vmem:[%s581_s1 + $0x28] sm:$0xff]  }
   0x5   :  { %v336_v13 = vld.sshfl [vmem:[%s580_s0] sm:$0x11 pattern:$0x75316420]  ;;  %v429_v17 = vld [vmem:[%s581_s1 + $0x70] sm:$0xff]   ;;  %v63_v20 = vsub.s32 %v60_v19, %v62_v12 }
   0x6   :  { %v57_v18 = vcombine.high %v336_v13, %v336_v13 }
   0x7   :  { %365 = vmatpush3.bf16.msra.mxu0 %v420_v3 }
   0x8   :  { %366 = vmatprep.subr.bf16.mxu0 %v421_v4 }
   0xb   :  { %367 = vmatpush3.bf16.msra.mxu0 %v422_v5 }
   0xc   :  { %368 = vmatprep.subr.bf16.mxu0 %v423_v6 }
   0xf   :  { %369 = vmatpush3.bf16.msra.mxu0 %v424_v7 }
  0x10   :  { %370 = vmatprep.subr.bf16.mxu0 %v425_v9 }
  0x13   :  { %371 = vmatpush3.bf16.msra.mxu0 %v426_v10 }
  0x14   :  { %372 = vmatprep.subr.bf16.mxu0 %v427_v11 }
  0x15   :  { %8 = vsyncpa [#allocation3], 0  ;;  %v430_v21 = vld [vmem:[%s581_s1 + $0x30] sm:$0xff]   ;;  %v71_v22 = vrot.slane %v57_v18, %v63_v20  ;;  %v431_v23 = vld [vmem:[%s581_s1 + $0x78] sm:$0xff]   ;;  %v64_v25 = vrot.slane %v336_v13, %v63_v20  ;;  %v470_v27 = vmov 0.0   ;;  %vm471_vm0 = vmmov 0  }
  0x16   :  { %v432_v24 = vld [vmem:[%s581_s1 + $0x38] sm:$0xff]   ;;  %v433_v26 = vld [vmem:[%s582_s2] sm:$0xff]   ;;  %393 = vmatprep.subr.bf16.mxu1 %v470_v27  ;;  %v434_v28 = vld [vmem:[%s582_s2 + $0x8] sm:$0xff]   ;;  %409 = vmatprep.mubr.msk.bf16.mxu1 %vm471_vm0, %v470_v27  ;;  %s472_s6 = smov [#allocation2]  }
  0x17   :  { %373 = vmatpush3.bf16.msra.mxu0 %v428_v14  ;;  %202 = vmatprep.mubr.bf16.mxu0 %v71_v22  ;;  %v435_v29 = vld [vmem:[%s582_s2 + $0x10] sm:$0xff]   ;;  %v436_v30 = vld [vmem:[%s582_s2 + $0x18] sm:$0xff]   ;;  %v437_v31 = vld [vmem:[%s582_s2 + $0x20] sm:$0xff]   ;;  %s328_s7 = sshll.u32 %s472_s6, 4  ;;  %s329_s7 = int_to_ptr.vmem [resolvable:$true] %s328_s7 }
  0x18   :  { %374 = vmatprep.subr.bf16.mxu0 %v429_v17  ;;  %394 = vmatpush3.bf16.msra.mxu1 %v433_v26  ;;  %v438_v32 = vld [vmem:[%s582_s2 + $0x28] sm:$0xff]   ;;  %v439_v33 = vld [vmem:[%s582_s2 + $0x30] sm:$0xff]   ;;  %v440_v34 = vld [vmem:[%s582_s2 + $0x38] sm:$0xff]   ;;  %s445_s2 = scalar_lea.vmem %s329_s7, 32  ;;  %p450_p1 = scmp.lt.s32.totalorder %s329_s7, %s329_s7 }
  0x19   :  { %395 = vmatprep.subr.bf16.mxu1 %v470_v27  ;;  %p446_p0 = scmp.ne.s32.totalorder %s329_s7, %s445_s2  ;;  %p451_p2 = scmp.lt.s32.totalorder %s445_s2, %s445_s2 }
  0x1b   :  { %375 = vmatpush3.bf16.msra.mxu0 %v430_v21  ;;  %p452_p3 = por %p451_p2, %p450_p1 }
  0x1c   :  { %376 = vmatprep.subr.bf16.mxu0 %v431_v23  ;;  %396 = vmatpush3.bf16.msra.mxu1 %v434_v28 }
  0x1d   :  { %397 = vmatprep.subr.bf16.mxu1 %v470_v27  ;;  %p453_p4 = pnand %p452_p3, %p446_p0 }
  0x1f   :  { %377 = vmatpush3.bf16.msra.mxu0 %v432_v24 }
  0x20   :  { %398 = vmatpush3.bf16.msra.mxu1 %v435_v29 }
  0x21   :  { %399 = vmatprep.subr.bf16.mxu1 %v470_v27 }
  0x22   :  { %203 = vmatmul.mubr.bf16.vlgmr.msra.gmra.mrb[0].mxu0 %v64_v25 }
  0x24   :  { %400 = vmatpush3.bf16.msra.mxu1 %v436_v30 }
  0x25   :  { %401 = vmatprep.subr.bf16.mxu1 %v470_v27 }
  0x28   :  { %402 = vmatpush3.bf16.msra.mxu1 %v437_v31 }
  0x29   :  { %403 = vmatprep.subr.bf16.mxu1 %v470_v27 }
  0x2c   :  { %404 = vmatpush3.bf16.msra.mxu1 %v438_v32 }
  0x2d   :  { %405 = vmatprep.subr.bf16.mxu1 %v470_v27 }
  0x30   :  { %406 = vmatpush3.bf16.msra.mxu1 %v439_v33 }
  0x31   :  { %407 = vmatprep.subr.bf16.mxu1 %v470_v27 }
  0x34   :  { %408 = vmatpush3.bf16.msra.mxu1 %v440_v34 }
  0xf5   :  { %v378_v35 = vpop.f32.mrb[0].mxu0 }
  0xf6   :  { %v379_v36 = vpop.f32.mrb[1].mxu0 }
  0xf7   :  { %v380_v37 = vadd.f32 %v379_v36, %v378_v35  ;;  %v381_v38 = vpop.f32.mrb[2].mxu0 }
  0xf8   :  { %v382_v39 = vpop.f32.mrb[3].mxu0 }
  0xf9   :  { %v353_v40 = vmul.f32 -1.442695, %v380_v37 }
  0xfb   :  { %441 = vpow2.f32 %v353_v40 }
 0x105   :  { %v442_v41 = vpop.eup %441 }
 0x106   :  { %v213_v42 = vadd.f32 1.0, %v442_v41 }
 0x108   :  { %443 = vrcp.f32 %v213_v42 }
 0x112   :  { %v444_v43 = vpop.eup %443 }
 0x113   :  { %v216_v44 = vpack.c.bf16 %v444_v43, %v444_v43 }
 0x115   :  { %410 = vmatmul.mubr.bf16.vlgmr.msra.gmra.mrb[0].mxu1 %v216_v44 }
 0x1e8   :  { %v315_v45 = vpop.f32.mrb[0].mxu1 }
 0x1e9   :  { %321 = vst [vmem:[#allocation2] sm:$0x3] %v315_v45  ;;  %v411_v46 = vpop.f32.mrb[1].mxu1 }
 0x1ea   :  { %v318_v47 = vpop.f32.mrb[2].mxu1 }
 0x1eb   :  { %456 = shalt.err (!%p453_p4)
}
 0x1ec   :  { %s457_s10 = scalar_lea.hbm %s583_s3, 32 }
 0x1ed   :  { %p458_p5 = scmp.ne.s32.totalorder %s583_s3, %s457_s10  ;;  %p461_p6 = scmp.lt.u32.totalorder %s457_s10, %s583_s3 }
 0x1ef   :  { %p463_p7 = pnand %p461_p6, %p458_p5 }
 0x1f1   :  { %466 = shalt.err (!%p463_p7)
}
 0x1f2   :  { %331 = dma.vmem_to_hbm [thread:$0]  %s329_s7, 32, %s583_s3, [#allocation3]   ;;  %v412_v48 = vpop.f32.mrb[3].mxu1 }
 0x1f3   :  { %467 = dma.done.wait [#allocation3], 32  }
 0x1f4   :  { %468 = vsyncadd [#allocation3], 4294967264 }
 0x1f5   :  { %335 = vsyncpa [#allocation3], 1 }

</bundles_post_ra>
